<compile_context>
chip_gen: v7x
topology: tpu7x:2x2x1
jax: 0.10.0
libtpu: 0.0.40
codegen_flags: <defaults>
</compile_context>

<pallas_src>
import functools

import jax
import jax.numpy as jnp
from jax import lax
from jax.experimental import pallas as pl
from jax.experimental.pallas import tpu as pltpu

# --------------------------- module hyper-params ---------------------------
# ConvNormAct(conv_params=(Cin, Cout, k, stride=1, padding=1), use_bn=True,
#             act=('relu', ()))
CIN, COUT, KSIZE, STRIDE, PAD = 4, 8, 3, 1, 1
CIN_PAD = 8                      # Cin zero-padded to one sublane tile
KK = KSIZE * KSIZE
USE_BN = True
BN_EPS = 1e-5
NEG_SLOPE = 0.0                  # ReLU (LeakyReLU would set its slope here)


def _round_up(v, m):
    return (v + m - 1) // m * m


def _ceil_div(a, b):
    return -(-a // b)


# ------------------------------ fused kernel -------------------------------
def _fused_kernel(x_ref, w_ref, gb_ref, o_ref, rhs_ref,
                  *, n, hp, wp, bpout, offset0, m_valid):
    """Conv(3x3) + BatchNorm(batch stats) + ReLU for the whole (small) batch.

    x_ref  : [N, CIN_PAD, G]        zero-guarded flattened padded images
    w_ref  : [COUT, KK*CIN_PAD]     weight, column index = tap*CIN_PAD + cin
    gb_ref : [2, COUT, 1]           (gamma, beta) if BN else (unused, bias)
    o_ref  : [N, COUT, BPOUT]       normalized+activated conv output
    rhs_ref: [KK*CIN_PAD, BPOUT]    VMEM scratch: packed tap slices (im2col)
    """
    # Validity mask over one image's lane block (identical for every image).
    # Invalid lanes = padding ring + lane padding; they are cropped later but
    # must not contaminate the batch statistics.
    lane = lax.broadcasted_iota(jnp.int32, (1, bpout), 1).astype(jnp.float32)
    row = jnp.floor(lane * (1.0 / wp) + 1e-4)        # exact: see header note
    col = lane - row * wp
    valid = ((lane >= PAD * wp) & (lane < (hp - PAD) * wp)
             & (col >= PAD) & (col < wp - PAD))

    # ---- conv: one [COUT, 72] x [72, BPOUT] MXU matmul per image ----
    accs = []
    s1 = jnp.zeros((COUT, 1), jnp.float32)
    for b in range(n):                               # n is small & static
        x_b = x_ref[b]                               # [CIN_PAD, G]
        for t in range(KK):
            dh, dw = divmod(t, KSIZE)
            start = offset0 + dh * wp + dw           # static lane offset
            rhs_ref[t * CIN_PAD:(t + 1) * CIN_PAD, :] = x_b[:, start:start + bpout]
        acc_b = jnp.dot(w_ref[...], rhs_ref[...],
                        preferred_element_type=jnp.float32)   # [COUT, BPOUT]
        acc_b = jnp.where(valid, acc_b, 0.0)         # mask once, reuse below
        accs.append(acc_b)
        s1 = s1 + jnp.sum(acc_b, axis=1, keepdims=True)

    # ---- fold BN (or bias) into a per-channel affine, in-kernel ----
    if USE_BN:
        inv_m = 1.0 / m_valid
        mean = s1 * inv_m                            # [COUT, 1]
        s2 = jnp.zeros((COUT, 1), jnp.float32)
        for b in range(n):                           # centered 2nd moment
            d = jnp.where(valid, accs[b] - mean, 0.0)
            s2 = s2 + jnp.sum(d * d, axis=1, keepdims=True)
        var = s2 * inv_m                             # biased (train mode)
        scale = gb_ref[0] * lax.rsqrt(var + BN_EPS)  # gamma * inv_std (EUP)
        # Conv bias is cancelled exactly by the mean subtraction -> dropped.
        shift = gb_ref[1] - mean * scale             # beta - mean*scale
    else:
        scale = jnp.ones((COUT, 1), jnp.float32)
        shift = gb_ref[1]                            # conv bias

    # ---- affine + activation, lane-dense stores ----
    for b in range(n):
        z = accs[b] * scale + shift
        if NEG_SLOPE == 0.0:
            z = jnp.maximum(z, 0.0)
        else:
            z = jnp.where(z > 0, z, NEG_SLOPE * z)
        o_ref[b] = z.astype(o_ref.dtype)


# ------------------------------- JAX wrapper --------------------------------
@jax.jit
def conv_norm_act(x, weight, bias, gamma, beta):
    """x: [N, Cin, H, W] (NCHW, like PyTorch). Returns [N, Cout, H, W]."""
    n, cin, h, w = x.shape
    hp, wp = h + 2 * PAD, w + 2 * PAD            # padded spatial grid
    f = hp * wp                                  # flattened padded positions
    guard = PAD * wp + PAD                       # max |tap shift| (flat)
    bpout = _round_up(f, 128)                    # lane-dense output width
    e_top = _ceil_div(guard, wp)                 # extra zero rows on top
    e_bot = _ceil_div(bpout + guard - f, wp)     # extra zero rows on bottom
    g_total = (hp + e_top + e_bot) * wp          # guarded flat width
    offset0 = e_top * wp - guard                 # base tap offset in kernel
    m_valid = n * h * w                          # valid BN samples

    # Single pad: channel pad Cin->CIN_PAD (so the in-kernel tap writes are
    # sublane-tile aligned) plus guard zero rows above/below the spatially
    # padded image; one reshape flattens it.  One HBM copy total.
    xg = jnp.pad(x, ((0, 0), (0, CIN_PAD - cin),
                     (PAD + e_top, PAD + e_bot), (PAD, PAD)))
    xg = xg.reshape(n, CIN_PAD, g_total)

    # [COUT, KK*CIN_PAD] weight; column index = tap*CIN_PAD + cin (zero-padded).
    wt = jnp.transpose(weight, (2, 3, 0, 1)).reshape(KK, COUT, cin)
    wt = jnp.pad(wt, ((0, 0), (0, 0), (0, CIN_PAD - cin)))
    w2 = jnp.transpose(wt, (1, 0, 2)).reshape(COUT, KK * CIN_PAD)

    if USE_BN:
        gb = jnp.stack([gamma, beta]).reshape(2, COUT, 1)
    else:
        gb = jnp.stack([jnp.zeros_like(bias), bias]).reshape(2, COUT, 1)

    kernel = functools.partial(_fused_kernel, n=n, hp=hp, wp=wp, bpout=bpout,
                               offset0=offset0, m_valid=m_valid)

    out = pl.pallas_call(
        kernel,
        out_shape=jax.ShapeDtypeStruct((n, COUT, bpout), jnp.float32),
        grid=(1,),
        in_specs=[
            pl.BlockSpec((n, CIN_PAD, g_total), lambda i: (0, 0, 0)),
            pl.BlockSpec((COUT, KK * CIN_PAD), lambda i: (0, 0)),
            pl.BlockSpec((2, COUT, 1), lambda i: (0, 0, 0)),
        ],
        out_specs=pl.BlockSpec((n, COUT, bpout), lambda i: (0, 0, 0)),
        scratch_shapes=[pltpu.VMEM((KK * CIN_PAD, bpout), jnp.float32)],
        compiler_params=pltpu.CompilerParams(
            dimension_semantics=("arbitrary",)),
        cost_estimate=pl.CostEstimate(
            flops=2 * n * COUT * KK * CIN_PAD * bpout,
            transcendentals=COUT,
            bytes_accessed=4 * (n * CIN_PAD * g_total + COUT * KK * CIN_PAD
                                + 2 * COUT + n * COUT * bpout)),
    )(xg, w2, gb)

    # Drop lane padding, unflatten, crop the padding ring (fuses in XLA).
    out = out[:, :, :f].reshape(n, COUT, hp, wp)
    return out[:, :, PAD:hp - PAD, PAD:wp - PAD]


# ---------------------------- pure-JAX reference ----------------------------
def reference(x, weight, bias, gamma, beta):
    y = lax.conv_general_dilated(
        x, weight, window_strides=(STRIDE, STRIDE),
        padding=((PAD, PAD), (PAD, PAD)),
        dimension_numbers=("NCHW", "OIHW", "NCHW"))
    y = y + bias.reshape(1, COUT, 1, 1)
    if USE_BN:
        mean = jnp.mean(y, axis=(0, 2, 3), keepdims=True)
        var = jnp.mean((y - mean) ** 2, axis=(0, 2, 3), keepdims=True)
        y = (y - mean) / jnp.sqrt(var + BN_EPS)
        y = y * gamma.reshape(1, COUT, 1, 1) + beta.reshape(1, COUT, 1, 1)
    return jnp.where(y > 0, y, NEG_SLOPE * y)


# ----------------------------------- main -----------------------------------
if __name__ == "__main__":
    key = jax.random.PRNGKey(0)
    kx, kw, kb = jax.random.split(key, 3)

    # Small shapes consistent with the module: N=2, Cin=4, H=W=16.
    x = jax.random.normal(kx, (2, CIN, 16, 16), dtype=jnp.float32)

    # Deterministic, PyTorch-like init (uniform in +/- 1/sqrt(fan_in)).
    fan_in = CIN * KSIZE * KSIZE
    bound = 1.0 / (fan_in ** 0.5)
    weight = jax.random.uniform(kw, (COUT, CIN, KSIZE, KSIZE),
                                minval=-bound, maxval=bound, dtype=jnp.float32)
    bias = jax.random.uniform(kb, (COUT,), minval=-bound, maxval=bound,
                              dtype=jnp.float32)
    gamma = jnp.ones((COUT,), jnp.float32)   # BatchNorm2d default affine init
    beta = jnp.zeros((COUT,), jnp.float32)

    out = conv_norm_act(x, weight, bias, gamma, beta)
    out = jax.block_until_ready(out)

    ref = reference(x, weight, bias, gamma, beta)
    assert out.shape == (2, COUT, 16, 16)
    err = float(jnp.max(jnp.abs(out - ref)))
    assert jnp.allclose(out, ref, atol=2e-4, rtol=2e-4), err

    print("KERNEL_OK")
</pallas_src>

<mosaic_0001>
module attributes {stable_mosaic.version = 11 : i64} {
  func.func @_fused_kernel(%arg0: i32, %arg1: memref<2x8x450xf32, #tpu.memory_space<vmem>>, %arg2: memref<8x72xf32, #tpu.memory_space<vmem>>, %arg3: memref<2x8x1xf32, #tpu.memory_space<vmem>>, %arg4: memref<2x8x384xf32, #tpu.memory_space<vmem>>, %arg5: memref<72x384xf32, #tpu.memory_space<vmem>>) attributes {dimension_semantics = [#tpu.dimension_semantics<arbitrary>], iteration_bounds = array<i64: 1>, scalar_prefetch = 0 : i64, scratch_operands = 1 : i64, tpu.core_type = #tpu.core_type<tc>, window_params = [{pipeline_mode = #tpu.pipeline_mode<synchronous>, transform_indices = @transform_0, window_bounds = array<i64: 2, 8, 450>}, {pipeline_mode = #tpu.pipeline_mode<synchronous>, transform_indices = @transform_1, window_bounds = array<i64: 8, 72>}, {pipeline_mode = #tpu.pipeline_mode<synchronous>, transform_indices = @transform_2, window_bounds = array<i64: 2, 8, 1>}, {pipeline_mode = #tpu.pipeline_mode<synchronous>, transform_indices = @transform_3, window_bounds = array<i64: 2, 8, 384>}]} {
    %0 = tpu.iota {dimensions = array<i32: 1>} : vector<1x384xi32>
    %1 = arith.sitofp %0 : vector<1x384xi32> to vector<1x384xf32>
    %cst = arith.constant 0.055555556 : f32
    %2 = vector.broadcast %cst : f32 to vector<1x384xf32>
    %3 = arith.mulf %1, %2 : vector<1x384xf32>
    %cst_0 = arith.constant 9.99999974E-5 : f32
    %4 = vector.broadcast %cst_0 : f32 to vector<1x384xf32>
    %5 = arith.addf %3, %4 : vector<1x384xf32>
    %6 = math.floor %5 : vector<1x384xf32>
    %cst_1 = arith.constant 1.800000e+01 : f32
    %7 = vector.broadcast %cst_1 : f32 to vector<1x384xf32>
    %8 = arith.mulf %6, %7 : vector<1x384xf32>
    %9 = arith.subf %1, %8 : vector<1x384xf32>
    %cst_2 = arith.constant 1.800000e+01 : f32
    %10 = vector.broadcast %cst_2 : f32 to vector<1x384xf32>
    %11 = arith.cmpf oge, %1, %10 : vector<1x384xf32>
    %cst_3 = arith.constant 3.060000e+02 : f32
    %12 = vector.broadcast %cst_3 : f32 to vector<1x384xf32>
    %13 = arith.cmpf olt, %1, %12 : vector<1x384xf32>
    %14 = arith.andi %11, %13 : vector<1x384xi1>
    %cst_4 = arith.constant 1.000000e+00 : f32
    %15 = vector.broadcast %cst_4 : f32 to vector<1x384xf32>
    %16 = arith.cmpf oge, %9, %15 : vector<1x384xf32>
    %17 = arith.andi %14, %16 : vector<1x384xi1>
    %cst_5 = arith.constant 1.700000e+01 : f32
    %18 = vector.broadcast %cst_5 : f32 to vector<1x384xf32>
    %19 = arith.cmpf olt, %9, %18 : vector<1x384xf32>
    %20 = arith.andi %17, %19 : vector<1x384xi1>
    %cst_6 = arith.constant 0.000000e+00 : f32
    %21 = vector.broadcast %cst_6 : f32 to vector<8x1xf32>
    %c0 = arith.constant 0 : index
    %c0_7 = arith.constant 0 : index
    %c0_8 = arith.constant 0 : index
    %22 = vector.load %arg1[%c0, %c0_7, %c0_8] : memref<2x8x450xf32, #tpu.memory_space<vmem>>, vector<1x8x450xf32>
    %23 = vector.shape_cast %22 : vector<1x8x450xf32> to vector<8x450xf32>
    %24 = vector.extract_strided_slice %23 {offsets = [0, 17], sizes = [8, 384], strides = [1, 1]} : vector<8x450xf32> to vector<8x384xf32>
    %c0_9 = arith.constant 0 : index
    %c0_10 = arith.constant 0 : index
    %25 = vector.load %arg5[%c0_9, %c0_10] : memref<72x384xf32, #tpu.memory_space<vmem>>, vector<8x384xf32>
    tpu.vector_store %arg5[%c0_9, %c0_10], %24 {strides = array<i32>} : memref<72x384xf32, #tpu.memory_space<vmem>>, vector<8x384xf32>,
    %26 = vector.extract_strided_slice %23 {offsets = [0, 18], sizes = [8, 384], strides = [1, 1]} : vector<8x450xf32> to vector<8x384xf32>
    %c8 = arith.constant 8 : index
    %c0_11 = arith.constant 0 : index
    %27 = vector.load %arg5[%c8, %c0_11] : memref<72x384xf32, #tpu.memory_space<vmem>>, vector<8x384xf32>
    tpu.vector_store %arg5[%c8, %c0_11], %26 {strides = array<i32>} : memref<72x384xf32, #tpu.memory_space<vmem>>, vector<8x384xf32>,
    %28 = vector.extract_strided_slice %23 {offsets = [0, 19], sizes = [8, 384], strides = [1, 1]} : vector<8x450xf32> to vector<8x384xf32>
    %c16 = arith.constant 16 : index
    %c0_12 = arith.constant 0 : index
    %29 = vector.load %arg5[%c16, %c0_12] : memref<72x384xf32, #tpu.memory_space<vmem>>, vector<8x384xf32>
    tpu.vector_store %arg5[%c16, %c0_12], %28 {strides = array<i32>} : memref<72x384xf32, #tpu.memory_space<vmem>>, vector<8x384xf32>,
    %30 = vector.extract_strided_slice %23 {offsets = [0, 35], sizes = [8, 384], strides = [1, 1]} : vector<8x450xf32> to vector<8x384xf32>
    %c24 = arith.constant 24 : index
    %c0_13 = arith.constant 0 : index
    %31 = vector.load %arg5[%c24, %c0_13] : memref<72x384xf32, #tpu.memory_space<vmem>>, vector<8x384xf32>
    tpu.vector_store %arg5[%c24, %c0_13], %30 {strides = array<i32>} : memref<72x384xf32, #tpu.memory_space<vmem>>, vector<8x384xf32>,
    %32 = vector.extract_strided_slice %23 {offsets = [0, 36], sizes = [8, 384], strides = [1, 1]} : vector<8x450xf32> to vector<8x384xf32>
    %c32 = arith.constant 32 : index
    %c0_14 = arith.constant 0 : index
    %33 = vector.load %arg5[%c32, %c0_14] : memref<72x384xf32, #tpu.memory_space<vmem>>, vector<8x384xf32>
    tpu.vector_store %arg5[%c32, %c0_14], %32 {strides = array<i32>} : memref<72x384xf32, #tpu.memory_space<vmem>>, vector<8x384xf32>,
    %34 = vector.extract_strided_slice %23 {offsets = [0, 37], sizes = [8, 384], strides = [1, 1]} : vector<8x450xf32> to vector<8x384xf32>
    %c40 = arith.constant 40 : index
    %c0_15 = arith.constant 0 : index
    %35 = vector.load %arg5[%c40, %c0_15] : memref<72x384xf32, #tpu.memory_space<vmem>>, vector<8x384xf32>
    tpu.vector_store %arg5[%c40, %c0_15], %34 {strides = array<i32>} : memref<72x384xf32, #tpu.memory_space<vmem>>, vector<8x384xf32>,
    %36 = vector.extract_strided_slice %23 {offsets = [0, 53], sizes = [8, 384], strides = [1, 1]} : vector<8x450xf32> to vector<8x384xf32>
    %c48 = arith.constant 48 : index
    %c0_16 = arith.constant 0 : index
    %37 = vector.load %arg5[%c48, %c0_16] : memref<72x384xf32, #tpu.memory_space<vmem>>, vector<8x384xf32>
    tpu.vector_store %arg5[%c48, %c0_16], %36 {strides = array<i32>} : memref<72x384xf32, #tpu.memory_space<vmem>>, vector<8x384xf32>,
    %38 = vector.extract_strided_slice %23 {offsets = [0, 54], sizes = [8, 384], strides = [1, 1]} : vector<8x450xf32> to vector<8x384xf32>
    %c56 = arith.constant 56 : index
    %c0_17 = arith.constant 0 : index
    %39 = vector.load %arg5[%c56, %c0_17] : memref<72x384xf32, #tpu.memory_space<vmem>>, vector<8x384xf32>
    tpu.vector_store %arg5[%c56, %c0_17], %38 {strides = array<i32>} : memref<72x384xf32, #tpu.memory_space<vmem>>, vector<8x384xf32>,
    %40 = vector.extract_strided_slice %23 {offsets = [0, 55], sizes = [8, 384], strides = [1, 1]} : vector<8x450xf32> to vector<8x384xf32>
    %c64 = arith.constant 64 : index
    %c0_18 = arith.constant 0 : index
    %41 = vector.load %arg5[%c64, %c0_18] : memref<72x384xf32, #tpu.memory_space<vmem>>, vector<8x384xf32>
    tpu.vector_store %arg5[%c64, %c0_18], %40 {strides = array<i32>} : memref<72x384xf32, #tpu.memory_space<vmem>>, vector<8x384xf32>,
    %c0_19 = arith.constant 0 : index
    %c0_20 = arith.constant 0 : index
    %42 = vector.load %arg2[%c0_19, %c0_20] : memref<8x72xf32, #tpu.memory_space<vmem>>, vector<8x72xf32>
    %c0_21 = arith.constant 0 : index
    %c0_22 = arith.constant 0 : index
    %43 = vector.load %arg5[%c0_21, %c0_22] : memref<72x384xf32, #tpu.memory_space<vmem>>, vector<72x384xf32>
    %cst_23 = arith.constant dense<0.000000e+00> : vector<8x384xf32>
    %44 = tpu.matmul %42, %43, %cst_23 {dimension_numbers = #tpu.dot_dimension_numbers<[1], [0], [0], [1], [0, 0, 1, 1], [], []>} : vector<8x72xf32>, vector<72x384xf32>, vector<8x384xf32> -> vector<8x384xf32>
    %cst_24 = arith.constant 0.000000e+00 : f32
    %45 = vector.shape_cast %20 : vector<1x384xi1> to vector<1x384xi1>
    %46 = vector.broadcast %45 : vector<1x384xi1> to vector<8x384xi1>
    %47 = vector.broadcast %cst_24 : f32 to vector<8x384xf32>
    %48 = arith.select %46, %44, %47 : vector<8x384xi1>, vector<8x384xf32>
    %cst_25 = arith.constant dense<0.000000e+00> : vector<8xf32>
    %49 = vector.multi_reduction <add>, %48, %cst_25 [1] : vector<8x384xf32> to vector<8xf32>
    %50 = vector.shape_cast %49 : vector<8xf32> to vector<8x1xf32>
    %51 = arith.addf %21, %50 : vector<8x1xf32>
    %c1 = arith.constant 1 : index
    %c0_26 = arith.constant 0 : index
    %c0_27 = arith.constant 0 : index
    %52 = vector.load %arg1[%c1, %c0_26, %c0_27] : memref<2x8x450xf32, #tpu.memory_space<vmem>>, vector<1x8x450xf32>
    %53 = vector.shape_cast %52 : vector<1x8x450xf32> to vector<8x450xf32>
    %54 = vector.extract_strided_slice %53 {offsets = [0, 17], sizes = [8, 384], strides = [1, 1]} : vector<8x450xf32> to vector<8x384xf32>
    %c0_28 = arith.constant 0 : index
    %c0_29 = arith.constant 0 : index
    %55 = vector.load %arg5[%c0_28, %c0_29] : memref<72x384xf32, #tpu.memory_space<vmem>>, vector<8x384xf32>
    tpu.vector_store %arg5[%c0_28, %c0_29], %54 {strides = array<i32>} : memref<72x384xf32, #tpu.memory_space<vmem>>, vector<8x384xf32>,
    %56 = vector.extract_strided_slice %53 {offsets = [0, 18], sizes = [8, 384], strides = [1, 1]} : vector<8x450xf32> to vector<8x384xf32>
    %c8_30 = arith.constant 8 : index
    %c0_31 = arith.constant 0 : index
    %57 = vector.load %arg5[%c8_30, %c0_31] : memref<72x384xf32, #tpu.memory_space<vmem>>, vector<8x384xf32>
    tpu.vector_store %arg5[%c8_30, %c0_31], %56 {strides = array<i32>} : memref<72x384xf32, #tpu.memory_space<vmem>>, vector<8x384xf32>,
    %58 = vector.extract_strided_slice %53 {offsets = [0, 19], sizes = [8, 384], strides = [1, 1]} : vector<8x450xf32> to vector<8x384xf32>
    %c16_32 = arith.constant 16 : index
    %c0_33 = arith.constant 0 : index
    %59 = vector.load %arg5[%c16_32, %c0_33] : memref<72x384xf32, #tpu.memory_space<vmem>>, vector<8x384xf32>
    tpu.vector_store %arg5[%c16_32, %c0_33], %58 {strides = array<i32>} : memref<72x384xf32, #tpu.memory_space<vmem>>, vector<8x384xf32>,
    %60 = vector.extract_strided_slice %53 {offsets = [0, 35], sizes = [8, 384], strides = [1, 1]} : vector<8x450xf32> to vector<8x384xf32>
    %c24_34 = arith.constant 24 : index
    %c0_35 = arith.constant 0 : index
    %61 = vector.load %arg5[%c24_34, %c0_35] : memref<72x384xf32, #tpu.memory_space<vmem>>, vector<8x384xf32>
    tpu.vector_store %arg5[%c24_34, %c0_35], %60 {strides = array<i32>} : memref<72x384xf32, #tpu.memory_space<vmem>>, vector<8x384xf32>,
    %62 = vector.extract_strided_slice %53 {offsets = [0, 36], sizes = [8, 384], strides = [1, 1]} : vector<8x450xf32> to vector<8x384xf32>
    %c32_36 = arith.constant 32 : index
    %c0_37 = arith.constant 0 : index
    %63 = vector.load %arg5[%c32_36, %c0_37] : memref<72x384xf32, #tpu.memory_space<vmem>>, vector<8x384xf32>
    tpu.vector_store %arg5[%c32_36, %c0_37], %62 {strides = array<i32>} : memref<72x384xf32, #tpu.memory_space<vmem>>, vector<8x384xf32>,
    %64 = vector.extract_strided_slice %53 {offsets = [0, 37], sizes = [8, 384], strides = [1, 1]} : vector<8x450xf32> to vector<8x384xf32>
    %c40_38 = arith.constant 40 : index
    %c0_39 = arith.constant 0 : index
    %65 = vector.load %arg5[%c40_38, %c0_39] : memref<72x384xf32, #tpu.memory_space<vmem>>, vector<8x384xf32>
    tpu.vector_store %arg5[%c40_38, %c0_39], %64 {strides = array<i32>} : memref<72x384xf32, #tpu.memory_space<vmem>>, vector<8x384xf32>,
    %66 = vector.extract_strided_slice %53 {offsets = [0, 53], sizes = [8, 384], strides = [1, 1]} : vector<8x450xf32> to vector<8x384xf32>
    %c48_40 = arith.constant 48 : index
    %c0_41 = arith.constant 0 : index
    %67 = vector.load %arg5[%c48_40, %c0_41] : memref<72x384xf32, #tpu.memory_space<vmem>>, vector<8x384xf32>
    tpu.vector_store %arg5[%c48_40, %c0_41], %66 {strides = array<i32>} : memref<72x384xf32, #tpu.memory_space<vmem>>, vector<8x384xf32>,
    %68 = vector.extract_strided_slice %53 {offsets = [0, 54], sizes = [8, 384], strides = [1, 1]} : vector<8x450xf32> to vector<8x384xf32>
    %c56_42 = arith.constant 56 : index
    %c0_43 = arith.constant 0 : index
    %69 = vector.load %arg5[%c56_42, %c0_43] : memref<72x384xf32, #tpu.memory_space<vmem>>, vector<8x384xf32>
    tpu.vector_store %arg5[%c56_42, %c0_43], %68 {strides = array<i32>} : memref<72x384xf32, #tpu.memory_space<vmem>>, vector<8x384xf32>,
    %70 = vector.extract_strided_slice %53 {offsets = [0, 55], sizes = [8, 384], strides = [1, 1]} : vector<8x450xf32> to vector<8x384xf32>
    %c64_44 = arith.constant 64 : index
    %c0_45 = arith.constant 0 : index
    %71 = vector.load %arg5[%c64_44, %c0_45] : memref<72x384xf32, #tpu.memory_space<vmem>>, vector<8x384xf32>
    tpu.vector_store %arg5[%c64_44, %c0_45], %70 {strides = array<i32>} : memref<72x384xf32, #tpu.memory_space<vmem>>, vector<8x384xf32>,
    %c0_46 = arith.constant 0 : index
    %c0_47 = arith.constant 0 : index
    %72 = vector.load %arg2[%c0_46, %c0_47] : memref<8x72xf32, #tpu.memory_space<vmem>>, vector<8x72xf32>
    %c0_48 = arith.constant 0 : index
    %c0_49 = arith.constant 0 : index
    %73 = vector.load %arg5[%c0_48, %c0_49] : memref<72x384xf32, #tpu.memory_space<vmem>>, vector<72x384xf32>
    %cst_50 = arith.constant dense<0.000000e+00> : vector<8x384xf32>
    %74 = tpu.matmul %72, %73, %cst_50 {dimension_numbers = #tpu.dot_dimension_numbers<[1], [0], [0], [1], [0, 0, 1, 1], [], []>} : vector<8x72xf32>, vector<72x384xf32>, vector<8x384xf32> -> vector<8x384xf32>
    %cst_51 = arith.constant 0.000000e+00 : f32
    %75 = vector.shape_cast %20 : vector<1x384xi1> to vector<1x384xi1>
    %76 = vector.broadcast %75 : vector<1x384xi1> to vector<8x384xi1>
    %77 = vector.broadcast %cst_51 : f32 to vector<8x384xf32>
    %78 = arith.select %76, %74, %77 : vector<8x384xi1>, vector<8x384xf32>
    %cst_52 = arith.constant dense<0.000000e+00> : vector<8xf32>
    %79 = vector.multi_reduction <add>, %78, %cst_52 [1] : vector<8x384xf32> to vector<8xf32>
    %80 = vector.shape_cast %79 : vector<8xf32> to vector<8x1xf32>
    %81 = arith.addf %51, %80 : vector<8x1xf32>
    %cst_53 = arith.constant 0.001953125 : f32
    %82 = vector.broadcast %cst_53 : f32 to vector<8x1xf32>
    %83 = arith.mulf %81, %82 : vector<8x1xf32>
    %cst_54 = arith.constant 0.000000e+00 : f32
    %84 = vector.broadcast %cst_54 : f32 to vector<8x1xf32>
    %85 = vector.broadcast %83 : vector<8x1xf32> to vector<8x384xf32>
    %86 = arith.subf %48, %85 : vector<8x384xf32>
    %cst_55 = arith.constant 0.000000e+00 : f32
    %87 = vector.shape_cast %20 : vector<1x384xi1> to vector<1x384xi1>
    %88 = vector.broadcast %87 : vector<1x384xi1> to vector<8x384xi1>
    %89 = vector.broadcast %cst_55 : f32 to vector<8x384xf32>
    %90 = arith.select %88, %86, %89 : vector<8x384xi1>, vector<8x384xf32>
    %91 = arith.mulf %90, %90 : vector<8x384xf32>
    %cst_56 = arith.constant dense<0.000000e+00> : vector<8xf32>
    %92 = vector.multi_reduction <add>, %91, %cst_56 [1] : vector<8x384xf32> to vector<8xf32>
    %93 = vector.shape_cast %92 : vector<8xf32> to vector<8x1xf32>
    %94 = arith.addf %84, %93 : vector<8x1xf32>
    %95 = vector.broadcast %83 : vector<8x1xf32> to vector<8x384xf32>
    %96 = arith.subf %78, %95 : vector<8x384xf32>
    %cst_57 = arith.constant 0.000000e+00 : f32
    %97 = vector.shape_cast %20 : vector<1x384xi1> to vector<1x384xi1>
    %98 = vector.broadcast %97 : vector<1x384xi1> to vector<8x384xi1>
    %99 = vector.broadcast %cst_57 : f32 to vector<8x384xf32>
    %100 = arith.select %98, %96, %99 : vector<8x384xi1>, vector<8x384xf32>
    %101 = arith.mulf %100, %100 : vector<8x384xf32>
    %cst_58 = arith.constant dense<0.000000e+00> : vector<8xf32>
    %102 = vector.multi_reduction <add>, %101, %cst_58 [1] : vector<8x384xf32> to vector<8xf32>
    %103 = vector.shape_cast %102 : vector<8xf32> to vector<8x1xf32>
    %104 = arith.addf %94, %103 : vector<8x1xf32>
    %cst_59 = arith.constant 0.001953125 : f32
    %105 = vector.broadcast %cst_59 : f32 to vector<8x1xf32>
    %106 = arith.mulf %104, %105 : vector<8x1xf32>
    %c0_60 = arith.constant 0 : index
    %c0_61 = arith.constant 0 : index
    %c0_62 = arith.constant 0 : index
    %107 = vector.load %arg3[%c0_60, %c0_61, %c0_62] : memref<2x8x1xf32, #tpu.memory_space<vmem>>, vector<1x8x1xf32>
    %108 = vector.shape_cast %107 : vector<1x8x1xf32> to vector<8x1xf32>
    %cst_63 = arith.constant 9.99999974E-6 : f32
    %109 = vector.broadcast %cst_63 : f32 to vector<8x1xf32>
    %110 = arith.addf %106, %109 : vector<8x1xf32>
    %111 = math.rsqrt %110 : vector<8x1xf32>
    %112 = arith.mulf %108, %111 : vector<8x1xf32>
    %c1_64 = arith.constant 1 : index
    %c0_65 = arith.constant 0 : index
    %c0_66 = arith.constant 0 : index
    %113 = vector.load %arg3[%c1_64, %c0_65, %c0_66] : memref<2x8x1xf32, #tpu.memory_space<vmem>>, vector<1x8x1xf32>
    %114 = vector.shape_cast %113 : vector<1x8x1xf32> to vector<8x1xf32>
    %115 = arith.mulf %83, %112 : vector<8x1xf32>
    %116 = arith.subf %114, %115 : vector<8x1xf32>
    %117 = vector.broadcast %112 : vector<8x1xf32> to vector<8x384xf32>
    %118 = arith.mulf %48, %117 : vector<8x384xf32>
    %119 = vector.broadcast %116 : vector<8x1xf32> to vector<8x384xf32>
    %120 = arith.addf %118, %119 : vector<8x384xf32>
    %cst_67 = arith.constant 0.000000e+00 : f32
    %121 = vector.broadcast %cst_67 : f32 to vector<8x384xf32>
    %122 = arith.maximumf %120, %121 : vector<8x384xf32>
    %c0_68 = arith.constant 0 : index
    %c0_69 = arith.constant 0 : index
    %c0_70 = arith.constant 0 : index
    %123 = vector.load %arg4[%c0_68, %c0_69, %c0_70] : memref<2x8x384xf32, #tpu.memory_space<vmem>>, vector<1x8x384xf32>
    %124 = vector.shape_cast %123 : vector<1x8x384xf32> to vector<8x384xf32>
    %125 = vector.shape_cast %122 : vector<8x384xf32> to vector<1x8x384xf32>
    tpu.vector_store %arg4[%c0_68, %c0_69, %c0_70], %125 {strides = array<i32>} : memref<2x8x384xf32, #tpu.memory_space<vmem>>, vector<1x8x384xf32>,
    %126 = vector.broadcast %112 : vector<8x1xf32> to vector<8x384xf32>
    %127 = arith.mulf %78, %126 : vector<8x384xf32>
    %128 = vector.broadcast %116 : vector<8x1xf32> to vector<8x384xf32>
    %129 = arith.addf %127, %128 : vector<8x384xf32>
    %cst_71 = arith.constant 0.000000e+00 : f32
    %130 = vector.broadcast %cst_71 : f32 to vector<8x384xf32>
    %131 = arith.maximumf %129, %130 : vector<8x384xf32>
    %c1_72 = arith.constant 1 : index
    %c0_73 = arith.constant 0 : index
    %c0_74 = arith.constant 0 : index
    %132 = vector.load %arg4[%c1_72, %c0_73, %c0_74] : memref<2x8x384xf32, #tpu.memory_space<vmem>>, vector<1x8x384xf32>
    %133 = vector.shape_cast %132 : vector<1x8x384xf32> to vector<8x384xf32>
    %134 = vector.shape_cast %131 : vector<8x384xf32> to vector<1x8x384xf32>
    tpu.vector_store %arg4[%c1_72, %c0_73, %c0_74], %134 {strides = array<i32>} : memref<2x8x384xf32, #tpu.memory_space<vmem>>, vector<1x8x384xf32>,
    return
  }
  func.func @transform_0(%arg0: i32) -> (i32, i32, i32) {
    %c0_i32 = arith.constant 0 : i32
    %c0_i32_0 = arith.constant 0 : i32
    %c0_i32_1 = arith.constant 0 : i32
    %c0_i32_2 = arith.constant 0 : i32
    return %c0_i32, %c0_i32_0, %c0_i32_1 : i32, i32, i32
  }
  func.func @transform_1(%arg0: i32) -> (i32, i32) {
    %c0_i32 = arith.constant 0 : i32
    %c0_i32_0 = arith.constant 0 : i32
    %c0_i32_1 = arith.constant 0 : i32
    return %c0_i32, %c0_i32_0 : i32, i32
  }
  func.func @transform_2(%arg0: i32) -> (i32, i32, i32) {
    %c0_i32 = arith.constant 0 : i32
    %c0_i32_0 = arith.constant 0 : i32
    %c0_i32_1 = arith.constant 0 : i32
    %c0_i32_2 = arith.constant 0 : i32
    return %c0_i32, %c0_i32_0, %c0_i32_1 : i32, i32, i32
  }
  func.func @transform_3(%arg0: i32) -> (i32, i32, i32) {
    %c0_i32 = arith.constant 0 : i32
    %c0_i32_0 = arith.constant 0 : i32
    %c0_i32_1 = arith.constant 0 : i32
    %c0_i32_2 = arith.constant 0 : i32
    return %c0_i32, %c0_i32_0, %c0_i32_1 : i32, i32, i32
  }
}

</mosaic_0001>

<bundles_post_ra>
// kernel: conv_norm_act.1
= control target key start
LH: loop header
LB: loop body
LE: loop exit
PB: predicated region body
PF: predicated region fallthrough
CT: control target
= control target key end

     0   :  { %v1140_v3 = vmov 0.0|0.0   ;;  %s1141_s20 = smov 111   ;;  %s1142_s21 = smov 110   ;;  %v1150_v10 = vmov 0.0   ;;  %vm1151_vm0 = vmmov 0   ;;  %vm73_vm1 = vcmask 908288   ;;  %s1395_s0 = inlined_call_operand.vmem [shape: f32[2,8,450], index: 0, kind: input, shape index: {}]   ;;  %s1396_s1 = inlined_call_operand.vmem [shape: f32[8,72], index: 1, kind: input, shape index: {}]   ;;  %s1397_s2 = inlined_call_operand.vmem [shape: f32[2,8,1], index: 2, kind: input, shape index: {}]   ;;  %s1398_s3 = inlined_call_operand.vmem [shape: f32[2,8,384], index: 3, kind: output, shape index: {}]  }
   0x1   :  { %v58_v0 = vld [vmem:[%s1395_s0 + $0x8] sm:$0xff]  ;;  %v59_v1 = vld [vmem:[%s1395_s0 + $0x10] sm:$0xff]  ;;  %v57_v2 = vld [vmem:[%s1395_s0] sm:$0xff]  ;;  %923 = vmatprep.subr.bf16.mxu1 %v1140_v3  ;;  %s1143_s22 = smov 109   ;;  %s1144_s23 = smov 93   ;;  %323 = vmatprep.mubr.f32.mxu0 %v1150_v10  ;;  %vm91_vm2 = vcmask 900096  }
   0x2   :  { %v976_v4 = vpack.i.bf16 %v59_v1, %v58_v0  ;;  %v60_v5 = vld [vmem:[%s1395_s0 + $0x18] sm:$0xff]  ;;  %s1145_s24 = smov 92   ;;  %s1146_s25 = smov 91   ;;  %v836_v7 = vld [vmem:[%s1395_s0 + $0x28] sm:$0xff]  ;;  %v837_v8 = vld [vmem:[%s1395_s0 + $0x30] sm:$0xff]  ;;  %883 = vmatprep.mubr.msk.f32.mxu1 %vm1151_vm0, %v1150_v10  ;;  %vm109_vm3 = vcmask 891904  }
   0x3   :  { %v986_v6 = vpack.i.bf16 %v60_v5, %v57_v2  ;;  %s1147_s26 = smov 75   ;;  %s1148_s27 = smov 74   ;;  %v1056_v9 = vpack.i.bf16 %v837_v8, %v836_v7  ;;  %v835_v11 = vld [vmem:[%s1395_s0 + $0x20] sm:$0xff]  ;;  %v838_v12 = vld [vmem:[%s1395_s0 + $0x38] sm:$0xff]  ;;  %vm127_vm4 = vcmask 760832   ;;  %vm145_vm5 = vcmask 752640  }
   0x4   :  { %977 = vrot.lane.b32.xlu0 %v976_v4, %s1141_s20  ;;  %s1149_s5 = smov 73   ;;  %v1066_v13 = vpack.i.bf16 %v838_v12, %v835_v11  ;;  %vm163_vm6 = vcmask 744448   ;;  %vm181_vm7 = vcmask 613376   ;;  %vm199_vm8 = vcmask 605184  }
   0x5   :  { %987 = vrot.lane.b32.xlu1 %v986_v6, %s1141_s20  ;;  %vm217_vm9 = vcmask 596992   ;;  %vm255_vm10 = vcmask 588800  }
   0x8   :  { %982 = vrot.lane.b32.xlu0 %v976_v4, %s1142_s21 }
   0x9   :  { %992 = vrot.lane.b32.xlu1 %v986_v6, %s1142_s21 }
   0xc   :  { %997 = vrot.lane.b32.xlu0 %v976_v4, %s1143_s22 }
   0xd   :  { %1002 = vrot.lane.b32.xlu1 %v976_v4, %s1144_s23 }
  0x10   :  { %1007 = vrot.lane.b32.xlu0 %v986_v6, %s1143_s22 }
  0x11   :  { %1012 = vrot.lane.b32.xlu1 %v986_v6, %s1144_s23 }
  0x14   :  { %1017 = vrot.lane.b32.xlu0 %v976_v4, %s1145_s24 }
  0x15   :  { %1022 = vrot.lane.b32.xlu1 %v976_v4, %s1146_s25 }
  0x18   :  { %1027 = vrot.lane.b32.xlu0 %v986_v6, %s1145_s24 }
  0x19   :  { %1032 = vrot.lane.b32.xlu1 %v986_v6, %s1146_s25 }
  0x1c   :  { %1037 = vrot.lane.b32.xlu0 %v976_v4, %s1147_s26 }
  0x1d   :  { %1042 = vrot.lane.b32.xlu1 %v976_v4, %s1148_s27 }
  0x20   :  { %1047 = vrot.lane.b32.xlu0 %v986_v6, %s1147_s26 }
  0x21   :  { %1052 = vrot.lane.b32.xlu1 %v986_v6, %s1148_s27 }
  0x24   :  { %211 = vrot.lane.b32.xlu0 %v58_v0, %s1149_s5 }
  0x25   :  { %213 = vrot.lane.b32.xlu1 %v59_v1, %s1149_s5 }
  0x28   :  { %1057 = vrot.lane.b32.xlu0 %v1056_v9, %s1141_s20 }
  0x29   :  { %1062 = vrot.lane.b32.xlu1 %v1056_v9, %s1142_s21 }
  0x2c   :  { %209 = vrot.lane.b32.xlu0 %v57_v2, %s1149_s5 }
  0x2d   :  { %1067 = vrot.lane.b32.xlu1 %v1066_v13, %s1141_s20 }
  0x30   :  { %1072 = vrot.lane.b32.xlu0 %v1066_v13, %s1142_s21 }
  0x31   :  { %215 = vrot.lane.b32.xlu1 %v60_v5, %s1149_s5 }
  0x34   :  { %1077 = vrot.lane.b32.xlu0 %v1056_v9, %s1143_s22 }
  0x35   :  { %1082 = vrot.lane.b32.xlu1 %v1056_v9, %s1144_s23 }
  0x38   :  { %1087 = vrot.lane.b32.xlu0 %v1066_v13, %s1143_s22 }
  0x39   :  { %1092 = vrot.lane.b32.xlu1 %v1066_v13, %s1144_s23 }
  0x3c   :  { %1097 = vrot.lane.b32.xlu0 %v1056_v9, %s1145_s24 }
  0x3d   :  { %1102 = vrot.lane.b32.xlu1 %v1056_v9, %s1146_s25 }
  0x40   :  { %1107 = vrot.lane.b32.xlu0 %v1066_v13, %s1145_s24 }
  0x41   :  { %1112 = vrot.lane.b32.xlu1 %v1066_v13, %s1146_s25 }
  0x44   :  { %1117 = vrot.lane.b32.xlu0 %v1056_v9, %s1147_s26 }
  0x45   :  { %1122 = vrot.lane.b32.xlu1 %v1056_v9, %s1148_s27 }
  0x48   :  { %1127 = vrot.lane.b32.xlu0 %v1066_v13, %s1147_s26 }
  0x49   :  { %1132 = vrot.lane.b32.xlu1 %v1066_v13, %s1148_s27 }
  0x4c   :  { %561 = vrot.lane.b32.xlu0 %v836_v7, %s1149_s5 }
  0x4d   :  { %563 = vrot.lane.b32.xlu1 %v837_v8, %s1149_s5 }
  0x50   :  { %559 = vrot.lane.b32.xlu0 %v835_v11, %s1149_s5 }
  0x51   :  { %565 = vrot.lane.b32.xlu1 %v838_v12, %s1149_s5 }
  0x76   :  { %v978_v14 = vpop.permute.xlu0 %977 }
  0x77   :  { %v988_v15 = vpop.permute.xlu1 %987  ;;  %v980_v16 = vunpack.i.h.bf16 %v978_v14  ;;  %v979_v17 = vunpack.i.l.bf16 %v978_v14 }
  0x78   :  { %v990_v18 = vunpack.i.h.bf16 %v988_v15  ;;  %v989_v19 = vunpack.i.l.bf16 %v988_v15 }
  0x79   :  { %v75_v26 = vsel %vm73_vm1, %v979_v17, %v980_v16 }
  0x7a   :  { %v983_v20 = vpop.permute.xlu0 %982  ;;  %v76_v28 = vsel %vm73_vm1, %v980_v16, %v990_v18  ;;  %v74_v32 = vsel %vm73_vm1, %v989_v19, %v979_v17 }
  0x7b   :  { %v985_v21 = vunpack.i.h.bf16 %v983_v20  ;;  %v984_v22 = vunpack.i.l.bf16 %v983_v20  ;;  %v993_v23 = vpop.permute.xlu1 %992 }
  0x7c   :  { %v995_v24 = vunpack.i.h.bf16 %v993_v23  ;;  %v994_v25 = vunpack.i.l.bf16 %v993_v23 }
  0x7d   :  { %v93_v27 = vsel %vm91_vm2, %v984_v22, %v985_v21 }
  0x7e   :  { %v998_v29 = vpop.permute.xlu0 %997  ;;  %v907_v30 = vpack.c.bf16 %v93_v27, %v75_v26  ;;  %v94_v31 = vsel %vm91_vm2, %v985_v21, %v995_v24  ;;  %v92_v33 = vsel %vm91_vm2, %v994_v25, %v984_v22 }
  0x7f   :  { %v1000_v34 = vunpack.i.h.bf16 %v998_v29  ;;  %v999_v35 = vunpack.i.l.bf16 %v998_v29  ;;  %v1003_v36 = vpop.permute.xlu1 %1002  ;;  %v924_v37 = vpack.c.bf16 %v94_v31, %v76_v28  ;;  %v909_v38 = vpack.c.bf16 %v92_v33, %v74_v32 }
  0x80   :  { %v1005_v39 = vunpack.i.h.bf16 %v1003_v36  ;;  %v1004_v40 = vunpack.i.l.bf16 %v1003_v36  ;;  %908 = vmatprep.subr.bf16.mxu0 %v907_v30 }
  0x81   :  { %925 = vmatpush3.bf16.msra.mxu1 %v924_v37  ;;  %910 = vmatpush1.bf16.msra.mxu0 %v909_v38  ;;  %v111_v41 = vsel %vm109_vm3, %v999_v35, %v1000_v34 }
  0x82   :  { %v1008_v42 = vpop.permute.xlu0 %1007  ;;  %v129_v43 = vsel %vm127_vm4, %v1004_v40, %v1005_v39  ;;  %926 = vmatprep.subr.bf16.mxu1 %v1140_v3 }
  0x83   :  { %v1010_v44 = vunpack.i.h.bf16 %v1008_v42  ;;  %v1009_v45 = vunpack.i.l.bf16 %v1008_v42  ;;  %v1013_v46 = vpop.permute.xlu1 %1012  ;;  %v911_v47 = vpack.c.bf16 %v129_v43, %v111_v41 }
  0x84   :  { %v1015_v48 = vunpack.i.h.bf16 %v1013_v46  ;;  %v1014_v49 = vunpack.i.l.bf16 %v1013_v46 }
  0x85   :  { %912 = vmatprep.subr.bf16.mxu0 %v911_v47  ;;  %v110_v50 = vsel %vm109_vm3, %v1009_v45, %v999_v35  ;;  %v112_v51 = vsel %vm109_vm3, %v1000_v34, %v1010_v44 }
  0x86   :  { %v1018_v52 = vpop.permute.xlu0 %1017  ;;  %v128_v53 = vsel %vm127_vm4, %v1014_v49, %v1004_v40  ;;  %v130_v54 = vsel %vm127_vm4, %v1005_v39, %v1015_v48  ;;  %v1275_v48 = vld [vmem:[%s1396_s1] sm:$0xff] }
  0x87   :  { %v1020_v55 = vunpack.i.h.bf16 %v1018_v52  ;;  %v1019_v56 = vunpack.i.l.bf16 %v1018_v52  ;;  %v1023_v57 = vpop.permute.xlu1 %1022  ;;  %v913_v58 = vpack.c.bf16 %v128_v53, %v110_v50  ;;  %v927_v59 = vpack.c.bf16 %v130_v54, %v112_v51 }
  0x88   :  { %v1025_v60 = vunpack.i.h.bf16 %v1023_v57  ;;  %v1024_v61 = vunpack.i.l.bf16 %v1023_v57 }
  0x89   :  { %914 = vmatpush1.bf16.msra.mxu0 %v913_v58  ;;  %928 = vmatpush3.bf16.msra.mxu1 %v927_v59  ;;  %v147_v62 = vsel %vm145_vm5, %v1019_v56, %v1020_v55 }
  0x8a   :  { %v1028_v63 = vpop.permute.xlu0 %1027  ;;  %v165_v0 = vsel %vm163_vm6, %v1024_v61, %v1025_v60  ;;  %929 = vmatprep.subr.bf16.mxu1 %v1140_v3 }
  0x8b   :  { %v1030_v1 = vunpack.i.h.bf16 %v1028_v63  ;;  %v1029_v2 = vunpack.i.l.bf16 %v1028_v63  ;;  %v1033_v4 = vpop.permute.xlu1 %1032  ;;  %v915_v5 = vpack.c.bf16 %v165_v0, %v147_v62 }
  0x8c   :  { %v1035_v6 = vunpack.i.h.bf16 %v1033_v4  ;;  %v1034_v7 = vunpack.i.l.bf16 %v1033_v4 }
  0x8d   :  { %916 = vmatprep.subr.bf16.mxu0 %v915_v5  ;;  %v146_v8 = vsel %vm145_vm5, %v1029_v2, %v1019_v56  ;;  %v148_v9 = vsel %vm145_vm5, %v1020_v55, %v1030_v1 }
  0x8e   :  { %v1038_v11 = vpop.permute.xlu0 %1037  ;;  %v164_v12 = vsel %vm163_vm6, %v1034_v7, %v1024_v61  ;;  %v166_v13 = vsel %vm163_vm6, %v1025_v60, %v1035_v6 }
  0x8f   :  { %v1040_v14 = vunpack.i.h.bf16 %v1038_v11  ;;  %v1039_v15 = vunpack.i.l.bf16 %v1038_v11  ;;  %v1043_v16 = vpop.permute.xlu1 %1042  ;;  %v917_v17 = vpack.c.bf16 %v164_v12, %v146_v8  ;;  %v930_v18 = vpack.c.bf16 %v166_v13, %v148_v9 }
  0x90   :  { %v1045_v19 = vunpack.i.h.bf16 %v1043_v16  ;;  %v1044_v20 = vunpack.i.l.bf16 %v1043_v16 }
  0x91   :  { %918 = vmatpush1.bf16.msra.mxu0 %v917_v17  ;;  %931 = vmatpush3.bf16.msra.mxu1 %v930_v18  ;;  %v183_v21 = vsel %vm181_vm7, %v1039_v15, %v1040_v14 }
  0x92   :  { %v1048_v22 = vpop.permute.xlu0 %1047  ;;  %v201_v23 = vsel %vm199_vm8, %v1044_v20, %v1045_v19  ;;  %932 = vmatprep.subr.bf16.mxu1 %v1140_v3 }
  0x93   :  { %v1050_v24 = vunpack.i.h.bf16 %v1048_v22  ;;  %v1049_v25 = vunpack.i.l.bf16 %v1048_v22  ;;  %v1053_v26 = vpop.permute.xlu1 %1052  ;;  %v919_v27 = vpack.c.bf16 %v201_v23, %v183_v21 }
  0x94   :  { %v1055_v28 = vunpack.i.h.bf16 %v1053_v26  ;;  %v1054_v29 = vunpack.i.l.bf16 %v1053_v26 }
  0x95   :  { %920 = vmatprep.subr.bf16.mxu0 %v919_v27  ;;  %v182_v30 = vsel %vm181_vm7, %v1049_v25, %v1039_v15  ;;  %v184_v31 = vsel %vm181_vm7, %v1040_v14, %v1050_v24 }
  0x96   :  { %v212_v32 = vpop.permute.xlu0 %211  ;;  %v200_v33 = vsel %vm199_vm8, %v1054_v29, %v1044_v20  ;;  %v202_v34 = vsel %vm199_vm8, %v1045_v19, %v1055_v28 }
  0x97   :  { %v214_v35 = vpop.permute.xlu1 %213  ;;  %v921_v36 = vpack.c.bf16 %v200_v33, %v182_v30  ;;  %v933_v37 = vpack.c.bf16 %v202_v34, %v184_v31 }
  0x98   :  { %v219_v38 = vsel %vm217_vm9, %v212_v32, %v214_v35 }
  0x99   :  { %922 = vmatpush1.bf16.msra.mxu0 %v921_v36  ;;  %934 = vmatpush3.bf16.msra.mxu1 %v933_v37 }
  0x9a   :  { %275 = vmatprep.subr.mxu0 %v219_v38  ;;  %v1058_v39 = vpop.permute.xlu0 %1057  ;;  %881 = vmatprep.subr.mxu1 %v1150_v10 }
  0x9b   :  { %v1060_v40 = vunpack.i.h.bf16 %v1058_v39  ;;  %v1059_v41 = vunpack.i.l.bf16 %v1058_v39  ;;  %v1063_v42 = vpop.permute.xlu1 %1062 }
  0x9c   :  { %v1065_v43 = vunpack.i.h.bf16 %v1063_v42  ;;  %v1064_v44 = vunpack.i.l.bf16 %v1063_v42 }
  0x9d   :  { %v432_v45 = vsel %vm73_vm1, %v1059_v41, %v1060_v40 }
  0x9e   :  { %v210_v46 = vpop.permute.xlu0 %209  ;;  %v449_v47 = vsel %vm91_vm2, %v1064_v44, %v1065_v43 }
  0x9f   :  { %v1068_v49 = vpop.permute.xlu1 %1067  ;;  %v218_v50 = vsel %vm217_vm9, %v210_v46, %v212_v32  ;;  %v935_v51 = vpack.c.bf16 %v449_v47, %v432_v45 }
  0xa0   :  { %276 = vmatpush1.msra.mxu0 %v218_v50  ;;  %v1070_v52 = vunpack.i.h.bf16 %v1068_v49  ;;  %v1069_v53 = vunpack.i.l.bf16 %v1068_v49 }
  0xa1   :  { %936 = vmatprep.subr.bf16.mxu0 %v935_v51  ;;  %833 = vmatmul.mubr.msk.f32.vlgmr.msra.gmra.mrb[0].mxu0 %vm255_vm10, %v1275_v48 }
  0xa2   :  { %v1073_v54 = vpop.permute.xlu0 %1072  ;;  %671 = vmatprep.mubr.f32.mxu0 %v1150_v10  ;;  %v433_v59 = vsel %vm73_vm1, %v1060_v40, %v1070_v52  ;;  %v431_v60 = vsel %vm73_vm1, %v1069_v53, %v1059_v41 }
  0xa3   :  { %v1075_v55 = vunpack.i.h.bf16 %v1073_v54  ;;  %v1074_v56 = vunpack.i.l.bf16 %v1073_v54  ;;  %v216_v57 = vpop.permute.xlu1 %215 }
  0xa4   :  { %v220_v58 = vsel %vm217_vm9, %v214_v35, %v216_v57 }
  0xa5   :  { %v448_v61 = vsel %vm91_vm2, %v1074_v56, %v1064_v44  ;;  %v450_v62 = vsel %vm91_vm2, %v1065_v43, %v1075_v55  ;;  %882 = vmatpush3.msra.mxu1 %v220_v58 }
  0xa6   :  { %v937_v63 = vpack.c.bf16 %v448_v61, %v431_v60  ;;  %v952_v0 = vpack.c.bf16 %v450_v62, %v433_v59  ;;  %v1078_v1 = vpop.permute.xlu0 %1077  ;;  %951 = vmatprep.subr.bf16.mxu1 %v1140_v3  ;;  %884 = vmatmul.mubr.msk.f32.vlgmr.msra.gmra.mrb[0].mxu1 %vm255_vm10, %v1275_v48 }
  0xa7   :  { %v1080_v2 = vunpack.i.h.bf16 %v1078_v1  ;;  %v1079_v4 = vunpack.i.l.bf16 %v1078_v1  ;;  %v1083_v5 = vpop.permute.xlu1 %1082  ;;  %904 = vmatprep.mubr.msk.f32.mxu1 %vm1151_vm0, %v1150_v10 }
  0xa8   :  { %v1085_v6 = vunpack.i.h.bf16 %v1083_v5  ;;  %v1084_v7 = vunpack.i.l.bf16 %v1083_v5  ;;  %938 = vmatpush1.bf16.msra.mxu0 %v937_v63  ;;  %953 = vmatpush3.bf16.msra.mxu1 %v952_v0 }
  0xa9   :  { %v466_v8 = vsel %vm109_vm3, %v1079_v4, %v1080_v2  ;;  %954 = vmatprep.subr.bf16.mxu1 %v1140_v3 }
  0xaa   :  { %v1088_v9 = vpop.permute.xlu0 %1087  ;;  %v483_v11 = vsel %vm127_vm4, %v1084_v7, %v1085_v6 }
  0xab   :  { %v1090_v12 = vunpack.i.h.bf16 %v1088_v9  ;;  %v1089_v13 = vunpack.i.l.bf16 %v1088_v9  ;;  %v1093_v14 = vpop.permute.xlu1 %1092  ;;  %v939_v15 = vpack.c.bf16 %v483_v11, %v466_v8  ;;  %v14_v11 = vlaneseq }
  0xac   :  { %v1095_v16 = vunpack.i.h.bf16 %v1093_v14  ;;  %v1094_v17 = vunpack.i.l.bf16 %v1093_v14 }
  0xad   :  { %v465_v18 = vsel %vm109_vm3, %v1089_v13, %v1079_v4  ;;  %v467_v19 = vsel %vm109_vm3, %v1080_v2, %v1090_v12  ;;  %940 = vmatprep.subr.bf16.mxu0 %v939_v15  ;;  %v15_v12 = vand.u32 127, %v14_v11 }
  0xae   :  { %v482_v20 = vsel %vm127_vm4, %v1094_v17, %v1084_v7  ;;  %v484_v21 = vsel %vm127_vm4, %v1085_v6, %v1095_v16  ;;  %v1098_v22 = vpop.permute.xlu0 %1097 }
  0xaf   :  { %v941_v23 = vpack.c.bf16 %v482_v20, %v465_v18  ;;  %v955_v24 = vpack.c.bf16 %v484_v21, %v467_v19  ;;  %v1100_v25 = vunpack.i.h.bf16 %v1098_v22  ;;  %v1099_v26 = vunpack.i.l.bf16 %v1098_v22  ;;  %v1103_v27 = vpop.permute.xlu1 %1102 }
  0xb0   :  { %v1105_v28 = vunpack.i.h.bf16 %v1103_v27  ;;  %v1104_v29 = vunpack.i.l.bf16 %v1103_v27  ;;  %v16_v13 = vadd.s32 128, %v15_v12  ;;  %v18_v14 = vcvt.s32.f32 %v15_v12 }
  0xb1   :  { %942 = vmatpush1.bf16.msra.mxu0 %v941_v23  ;;  %956 = vmatpush3.bf16.msra.mxu1 %v955_v24  ;;  %v500_v30 = vsel %vm145_vm5, %v1099_v26, %v1100_v25  ;;  %v17_v16 = vadd.s32 256, %v15_v12 }
  0xb2   :  { %v1108_v31 = vpop.permute.xlu0 %1107  ;;  %v517_v32 = vsel %vm163_vm6, %v1104_v29, %v1105_v28  ;;  %957 = vmatprep.subr.bf16.mxu1 %v1140_v3  ;;  %v19_v15 = vcvt.s32.f32 %v16_v13  ;;  %vm36_vm11 = vcmp.ge.f32.partialorder %v18_v14, 18.0  ;;  %vm39_vm12 = vcmp.lt.f32.partialorder %v18_v14, 306.0 }
  0xb3   :  { %v1110_v33 = vunpack.i.h.bf16 %v1108_v31  ;;  %v1109_v34 = vunpack.i.l.bf16 %v1108_v31  ;;  %v1113_v35 = vpop.permute.xlu1 %1112  ;;  %v943_v36 = vpack.c.bf16 %v517_v32, %v500_v30  ;;  %v20_v18 = vcvt.s32.f32 %v17_v16  ;;  %vm42_vm15 = vmand %vm36_vm11, %vm39_vm12 }
  0xb4   :  { %v1115_v37 = vunpack.i.h.bf16 %v1113_v35  ;;  %v1114_v38 = vunpack.i.l.bf16 %v1113_v35  ;;  %v22_v17 = vmul.f32 0.055555556, %v19_v15  ;;  %vm37_vm13 = vcmp.ge.f32.partialorder %v19_v15, 18.0 }
  0xb5   :  { %v499_v39 = vsel %vm145_vm5, %v1109_v34, %v1099_v26  ;;  %v501_v40 = vsel %vm145_vm5, %v1100_v25, %v1110_v33  ;;  %944 = vmatprep.subr.bf16.mxu0 %v943_v36  ;;  %v23_v21 = vmul.f32 0.055555556, %v20_v18  ;;  %vm40_vm14 = vcmp.lt.f32.partialorder %v19_v15, 306.0 }
  0xb6   :  { %v516_v41 = vsel %vm163_vm6, %v1114_v38, %v1104_v29  ;;  %v518_v42 = vsel %vm163_vm6, %v1105_v28, %v1115_v37  ;;  %v1118_v43 = vpop.permute.xlu0 %1117  ;;  %v25_v20 = vadd.f32 0.0001, %v22_v17  ;;  %vm43_vm1 = vmand %vm37_vm13, %vm40_vm14  ;;  %vm38_vm3 = vcmp.ge.f32.partialorder %v20_v18, 18.0 }
  0xb7   :  { %v945_v44 = vpack.c.bf16 %v516_v41, %v499_v39  ;;  %v958_v45 = vpack.c.bf16 %v518_v42, %v501_v40  ;;  %v1120_v46 = vunpack.i.h.bf16 %v1118_v43  ;;  %v1119_v47 = vunpack.i.l.bf16 %v1118_v43  ;;  %v1123_v49 = vpop.permute.xlu1 %1122 }
  0xb8   :  { %v1125_v50 = vunpack.i.h.bf16 %v1123_v49  ;;  %v1124_v51 = vunpack.i.l.bf16 %v1123_v49  ;;  %v28_v23 = vfloor.f32 %v25_v20  ;;  %v26_v24 = vadd.f32 0.0001, %v23_v21  ;;  %v786_v21 = vld [vmem:[%s1397_s2] sm:$0xff] }
  0xb9   :  { %946 = vmatpush1.bf16.msra.mxu0 %v945_v44  ;;  %959 = vmatpush3.bf16.msra.mxu1 %v958_v45  ;;  %v534_v52 = vsel %vm181_vm7, %v1119_v47, %v1120_v46  ;;  %vm41_vm4 = vcmp.lt.f32.partialorder %v20_v18, 306.0  ;;  %v1152_v16 = vmov 0  }
  0xba   :  { %v1128_v53 = vpop.permute.xlu0 %1127  ;;  %v551_v54 = vsel %vm199_vm8, %v1124_v51, %v1125_v50  ;;  %960 = vmatprep.subr.bf16.mxu1 %v1140_v3  ;;  %v31_v26 = vmul.f32 18.0, %v28_v23  ;;  %v29_v27 = vfloor.f32 %v26_v24  ;;  %1136 = vset.pattern.permute.xlu1 %v1152_v16  ;;  %v841_v24 = vld [vmem:[%s1397_s2 + $0x8] sm:$0xff] }
  0xbb   :  { %v1130_v55 = vunpack.i.h.bf16 %v1128_v53  ;;  %v1129_v56 = vunpack.i.l.bf16 %v1128_v53  ;;  %v1133_v57 = vpop.permute.xlu1 %1132  ;;  %v947_v58 = vpack.c.bf16 %v551_v54, %v534_v52  ;;  %1137 = vset.pattern.permute.xlu0 %v1152_v16 }
  0xbc   :  { %v1135_v59 = vunpack.i.h.bf16 %v1133_v57  ;;  %v1134_v60 = vunpack.i.l.bf16 %v1133_v57  ;;  %v32_v29 = vmul.f32 18.0, %v29_v27 }
  0xbd   :  { %v533_v61 = vsel %vm181_vm7, %v1129_v56, %v1119_v47  ;;  %v535_v62 = vsel %vm181_vm7, %v1120_v46, %v1130_v55  ;;  %948 = vmatprep.subr.bf16.mxu0 %v947_v58 }
  0xbe   :  { %v550_v63 = vsel %vm199_vm8, %v1134_v60, %v1124_v51  ;;  %v552_v0 = vsel %vm199_vm8, %v1125_v50, %v1135_v59  ;;  %v562_v1 = vpop.permute.xlu0 %561  ;;  %v35_v30 = vsub.f32 %v20_v18, %v32_v29 }
  0xbf   :  { %v949_v2 = vpack.c.bf16 %v550_v63, %v533_v61  ;;  %v961_v4 = vpack.c.bf16 %v552_v0, %v535_v62  ;;  %v564_v5 = vpop.permute.xlu1 %563 }
  0xc0   :  { %v568_v3 = vsel %vm217_vm9, %v562_v1, %v564_v5  ;;  %vm53_vm14 = vcmp.lt.f32.partialorder %v35_v30, 17.0 }
  0xc1   :  { %950 = vmatpush1.bf16.msra.mxu0 %v949_v2  ;;  %962 = vmatpush3.bf16.msra.mxu1 %v961_v4 }
  0xc2   :  { %623 = vmatprep.subr.mxu0 %v568_v3  ;;  %v560_v6 = vpop.permute.xlu0 %559  ;;  %902 = vmatprep.subr.mxu1 %v1150_v10  ;;  %v21_v10 = vmul.f32 0.055555556, %v18_v14 }
  0xc3   :  { %v567_v7 = vsel %vm217_vm9, %v560_v6, %v562_v1  ;;  %v566_v8 = vpop.permute.xlu1 %565 }
  0xc4   :  { %v569_v9 = vsel %vm217_vm9, %v564_v5, %v566_v8  ;;  %v24_v19 = vadd.f32 0.0001, %v21_v10  ;;  %vm44_vm9 = vmand %vm38_vm3, %vm41_vm4 }
  0xc5   :  { %624 = vmatpush1.msra.mxu0 %v567_v7  ;;  %903 = vmatpush3.msra.mxu1 %v569_v9 }
  0xc6   :  { %839 = vmatmul.mubr.msk.f32.vlgmr.msra.gmra.mrb[2].mxu0 %vm255_vm10, %v1275_v48  ;;  %905 = vmatmul.mubr.msk.f32.vlgmr.msra.gmra.mrb[2].mxu1 %vm255_vm10, %v1275_v48  ;;  %v27_v22 = vfloor.f32 %v24_v19  ;;  %v34_v48 = vsub.f32 %v19_v15, %v31_v26  ;;  %vm47_vm10 = vcmp.ge.f32.partialorder %v35_v30, 1.0 }
  0xc7   :  { %vm50_vm13 = vmand %vm44_vm9, %vm47_vm10 }
  0xc8   :  { %v30_v25 = vmul.f32 18.0, %v27_v22  ;;  %vm46_vm2 = vcmp.ge.f32.partialorder %v34_v48, 1.0  ;;  %vm52_vm8 = vcmp.lt.f32.partialorder %v34_v48, 17.0 }
  0xc9   :  { %vm49_vm7 = vmand %vm43_vm1, %vm46_vm2 }
  0xca   :  { %v33_v28 = vsub.f32 %v18_v14, %v30_v25  ;;  %vm1324_vm12 = vmand %vm49_vm7, %vm52_vm8 }
  0xcc   :  { %vm45_vm0 = vcmp.ge.f32.partialorder %v33_v28, 1.0  ;;  %vm51_vm6 = vcmp.lt.f32.partialorder %v33_v28, 17.0 }
  0xcd   :  { %vm48_vm5 = vmand %vm42_vm15, %vm45_vm0 }
  0xce   :  { %vm1320_vm11 = vmand %vm48_vm5, %vm51_vm6 }
  0xcf   :  { %vm1338_vm15 = vmand %vm50_vm13, %vm53_vm14 }
 0x174   :  { %v325_v33 = vpop.f32.mrb[0].mxu0 }
 0x175   :  { %v1330_v34 = vsel %vm1320_vm11, %v325_v33, 0.0  ;;  %v327_v35 = vpop.f32.mrb[1].mxu0 }
 0x176   :  { %v1334_v36 = vsel %vm1324_vm12, %v327_v35, 0.0 }
 0x177   :  { %v409_v37 = vadd.f32 %v1334_v36, %v1330_v34 }
 0x179   :  { %v396_v39 = vpop.f32.mrb[0].mxu1 }
 0x17a   :  { %v1344_v40 = vsel %vm1338_vm15, %v396_v39, 0.0  ;;  %v885_v41 = vpop.f32.mrb[1].mxu1 }
 0x17b   :  { %v410_v42 = vadd.f32 %v409_v37, %v1344_v40 }
 0x17d   :  { %411 = vadd.xlane.f32.xlu0 %v410_v42 }
 0x199   :  { %v673_v43 = vpop.f32.mrb[2].mxu0  ;;  %v744_v44 = vpop.f32.mrb[2].mxu1 }
 0x19a   :  { %v748_v45 = vsel %vm1320_vm11, %v673_v43, 0.0  ;;  %v675_v46 = vpop.f32.mrb[3].mxu0  ;;  %v906_v47 = vpop.f32.mrb[3].mxu1  ;;  %v750_v50 = vsel %vm1338_vm15, %v744_v44, 0.0 }
 0x19b   :  { %v749_v49 = vsel %vm1324_vm12, %v675_v46, 0.0 }
 0x19c   :  { %v751_v51 = vadd.f32 %v749_v49, %v748_v45 }
 0x19e   :  { %v752_v52 = vadd.f32 %v751_v51, %v750_v50 }
 0x1a0   :  { %753 = vadd.xlane.f32.xlu1 %v752_v52 }
 0x20a   :  { %v412_v53 = vpop.xlane.xlu0 %411 }
 0x22d   :  { %v754_v54 = vpop.xlane.xlu1 %753 }
 0x22e   :  { %v755_v55 = vadd.f32 %v754_v54, %v412_v53 }
 0x230   :  { %v756_v56 = vmul.f32 0.001953125, %v755_v55 }
 0x232   :  { %v757_v57 = vsub.f32 %v1330_v34, %v756_v56  ;;  %v758_v58 = vsub.f32 %v1334_v36, %v756_v56  ;;  %v759_v59 = vsub.f32 %v1344_v40, %v756_v56  ;;  %v771_v60 = vsub.f32 %v748_v45, %v756_v56 }
 0x233   :  { %v772_v61 = vsub.f32 %v749_v49, %v756_v56  ;;  %v773_v62 = vsub.f32 %v750_v50, %v756_v56 }
 0x234   :  { %v760_v63 = vsel %vm1320_vm11, %v757_v57, 0.0  ;;  %v761_v0 = vsel %vm1324_vm12, %v758_v58, 0.0  ;;  %v762_v1 = vsel %vm1338_vm15, %v759_v59, 0.0  ;;  %v774_v2 = vsel %vm1320_vm11, %v771_v60, 0.0 }
 0x235   :  { %v763_v4 = vmul.f32 %v760_v63, %v760_v63  ;;  %v764_v5 = vmul.f32 %v761_v0, %v761_v0  ;;  %v775_v3 = vsel %vm1324_vm12, %v772_v61, 0.0  ;;  %v777_v6 = vmul.f32 %v774_v2, %v774_v2 }
 0x236   :  { %v778_v7 = vmul.f32 %v775_v3, %v775_v3  ;;  %v765_v8 = vmul.f32 %v762_v1, %v762_v1  ;;  %v776_v11 = vsel %vm1338_vm15, %v773_v62, 0.0 }
 0x237   :  { %v766_v9 = vadd.f32 %v764_v5, %v763_v4  ;;  %v779_v14 = vmul.f32 %v776_v11, %v776_v11 }
 0x238   :  { %v780_v13 = vadd.f32 %v778_v7, %v777_v6 }
 0x239   :  { %v767_v12 = vadd.f32 %v766_v9, %v765_v8 }
 0x23a   :  { %v781_v15 = vadd.f32 %v780_v13, %v779_v14 }
 0x23b   :  { %768 = vadd.xlane.f32.xlu0 %v767_v12 }
 0x23f   :  { %782 = vadd.xlane.f32.xlu0 %v781_v15 }
 0x2c8   :  { %v769_v10 = vpop.xlane.xlu0 %768 }
 0x2cc   :  { %v783_v17 = vpop.xlane.xlu0 %782 }
 0x2cd   :  { %v784_v18 = vadd.f32 %v783_v17, %v769_v10 }
 0x2cf   :  { %v785_v19 = vmul.f32 0.001953125, %v784_v18 }
 0x2d1   :  { %v787_v20 = vadd.f32 1e-05, %v785_v19 }
 0x2d3   :  { %1138 = vrsqrt.f32 %v787_v20 }
 0x2dd   :  { %v1139_v22 = vpop.eup %1138 }
 0x2de   :  { %v789_v23 = vmul.f32 %v1139_v22, %v786_v21 }
 0x2e0   :  { %796 = vperm.xlu1 %1136, %v789_v23   ;;  %v792_v25 = vmul.f32 %v789_v23, %v756_v56 }
 0x2e2   :  { %v793_v26 = vsub.f32 %v841_v24, %v792_v25 }
 0x2e4   :  { %804 = vperm.xlu0 %1137, %v793_v26  }
 0x35f   :  { %v797_v27 = vpop.permute.xlu1 %796 }
 0x360   :  { %v799_v28 = vmul.f32 %v797_v27, %v1330_v34  ;;  %v800_v48 = vmul.f32 %v797_v27, %v1334_v36  ;;  %v801_v29 = vmul.f32 %v797_v27, %v1344_v40  ;;  %v816_v30 = vmul.f32 %v797_v27, %v748_v45 }
 0x361   :  { %v817_v31 = vmul.f32 %v797_v27, %v749_v49  ;;  %v818_v32 = vmul.f32 %v797_v27, %v750_v50 }
 0x363   :  { %v805_v33 = vpop.permute.xlu0 %804 }
 0x364   :  { %v807_v35 = vadd.f32 %v805_v33, %v799_v28  ;;  %v808_v37 = vadd.f32 %v805_v33, %v800_v48  ;;  %v809_v38 = vadd.f32 %v805_v33, %v801_v29  ;;  %v819_v39 = vadd.f32 %v816_v30, %v805_v33 }
 0x365   :  { %v820_v41 = vadd.f32 %v817_v31, %v805_v33  ;;  %v821_v42 = vadd.f32 %v818_v32, %v805_v33 }
 0x366   :  { %v810_v43 = vmax.f32 %v807_v35, 0.0  ;;  %v811_v44 = vmax.f32 %v808_v37, 0.0  ;;  %v812_v46 = vmax.f32 %v809_v38, 0.0  ;;  %v822_v47 = vmax.f32 %v819_v39, 0.0 }
 0x367   :  { %v823_v51 = vmax.f32 %v820_v41, 0.0  ;;  %v824_v34 = vmax.f32 %v821_v42, 0.0 }
 0x368   :  { %813 = vst [vmem:[%s1398_s3] sm:$0xff] %v810_v43  ;;  %814 = vst [vmem:[%s1398_s3 + $0x8] sm:$0xff] %v811_v44 }
 0x369   :  { %815 = vst [vmem:[%s1398_s3 + $0x10] sm:$0xff] %v812_v46  ;;  %842 = vst [vmem:[%s1398_s3 + $0x18] sm:$0xff] %v822_v47 }
 0x36a   :  { %843 = vst [vmem:[%s1398_s3 + $0x20] sm:$0xff] %v823_v51  ;;  %844 = vst [vmem:[%s1398_s3 + $0x28] sm:$0xff] %v824_v34 }

</bundles_post_ra>
